<compile_context>
chip_gen: v5e
topology: v5e:2x2
jax: 0.10.0
libtpu: 0.0.40
codegen_flags: <defaults>
</compile_context>

<pallas_src>
from functools import partial

import jax
import jax.numpy as jnp
from jax import lax
from jax.experimental import pallas as pl
from jax.experimental.pallas import tpu as pltpu

SMOOTH = 1.0            # DiceLoss.smooth
N_SPATIAL_SPLITS = 2    # second "parallel" grid axis -> both v7x TCs busy even at N == 1


def _bf16_intermediates_ok():
    """bf16 VPU/EUP exist on v6e/v7x; v5e (and older) keep f32 intermediates."""
    try:
        kind = jax.devices()[0].device_kind.lower()
        return ("v6" in kind) or ("v7" in kind)
    except Exception:
        return False


def _dice_kernel(logits_ref, tgt_ref, inter_ref, denom_ref, *,
                 s_total, tile, tiles_per_split, compute_dtype, any_tail):
    si = pl.program_id(2)

    # Start of this (batch, spatial-half) sweep: zero the resident accumulators.
    @pl.when(si == 0)
    def _():
        inter_ref[...] = jnp.zeros_like(inter_ref)
        denom_ref[...] = jnp.zeros_like(denom_ref)

    # bf16 intermediates on v6e/v7x (bf16 VPU/EUP) halve the elementwise vector-op
    # count; the reductions below still accumulate in f32.
    x = logits_ref[0].astype(compute_dtype)        # (C_pad, TILE)
    t = tgt_ref[0].astype(jnp.int32)               # (1, TILE)
    c_dim, ts = x.shape

    # Numerically-stable softmax over the class (sublane) axis, per pixel.
    # NOTE: approx reciprocal is a deliberate ~1e-3-relative deviation from the exact
    # reference (divide moved onto the EUP, off the VALU).
    m = jnp.max(x, axis=0, keepdims=True)
    e = jnp.exp(x - m)
    z = jnp.sum(e, axis=0, keepdims=True, dtype=jnp.float32)
    p = e * pl.reciprocal(z, approx=True).astype(compute_dtype)

    # Implicit one-hot: narrow (C, 1) iota vs (1, TILE) targets; compare broadcasts.
    cls_ids = lax.broadcasted_iota(jnp.int32, (c_dim, 1), 0)
    hit = cls_ids == t                              # (C_pad, TILE) bool
    hit_f = hit.astype(compute_dtype)

    def _acc(inter_sel, denom_sel):
        # Lane reductions accumulate in f32 regardless of the elementwise dtype.
        inter_ref[0, 0] += jnp.sum(inter_sel, axis=1, keepdims=True, dtype=jnp.float32)
        denom_ref[0, 0] += jnp.sum(denom_sel, axis=1, keepdims=True, dtype=jnp.float32)

    # TODO(synk): if v7x profiles still show the VPU slot binding, offload the
    # normalize + lane-sum onto the idle MXU as (C, tile) @ (tile, k) matvecs.

    if not any_tail:
        # Statically no partial tiles anywhere -> single unmasked fast path.
        _acc(jnp.where(hit, p, 0), p + hit_f)
    else:
        g = pl.program_id(1) * tiles_per_split + si     # global spatial tile index
        is_tail = (g + 1) * tile > s_total

        @pl.when(jnp.logical_not(is_tail))
        def _():
            # Hot path: interior tiles skip the lane-validity mask entirely.
            _acc(jnp.where(hit, p, 0), p + hit_f)

        @pl.when(is_tail)
        def _():
            # Tail (or fully out-of-range, clamped re-read) tile: lanes past s_total
            # hold unspecified data, so the mask MUST stay inside the where-selects
            # (select discards inf/NaN in the dead operand).  Do not refactor into
            # multiply-after-sum.
            lane = lax.broadcasted_iota(jnp.int32, (1, ts), 1)
            valid = (g * tile + lane) < s_total
            _acc(jnp.where(jnp.logical_and(hit, valid), p, 0),
                 jnp.where(valid, p + hit_f, 0))


def _auto_spatial_tile(s, c_pad, in_itemsize, cmp_itemsize, n_splits):
    # VMEM footprint per spatial lane of one tile (bytes), counting in-kernel
    # temporaries and not just the double-buffered input block:
    #   2 * C * in_itemsize        double-buffered logits block
    #   2                          double-buffered int8 target block
    #   ~4 * C * cmp_itemsize      live elementwise temps (x, e, p, select results)
    #   ~2 * C * 4                 f32 copies produced by the dtype=f32 lane reductions
    per_lane = 2 * c_pad * in_itemsize + 2 + 4 * c_pad * cmp_itemsize + 2 * c_pad * 4
    budget = 10 * 1024 * 1024   # total footprint target: fits v5e's 16 MiB default
                                # scoped VMEM with headroom; v6e/v7x default is 32 MiB.
    max_tile = max(128, (budget // per_lane) // 128 * 128)
    s_per_split = pl.cdiv(s, n_splits)
    s_needed = ((s_per_split + 127) // 128) * 128
    return int(min(s_needed, max_tile, 8192))


def dice_loss(logits, targets, *, spatial_tile=None, compute_dtype=None):
    """logits: (N, C, H, W) float32/bfloat16; targets: (N, H, W) integer class ids.

    Returns 1 - mean(dice), matching PyTorch DiceLoss(smooth=1) on BEiTSegmentation
    logits.  Feed bf16 logits only if the cast is fused into the producer upstream;
    a standalone f32->bf16 cast in the wrapper is a net loss.
    """
    n, c, h, w = logits.shape
    s = h * w
    in_dtype = jnp.dtype(logits.dtype)

    if compute_dtype is None:
        compute_dtype = (jnp.bfloat16
                         if (in_dtype == jnp.bfloat16 and _bf16_intermediates_ok())
                         else jnp.float32)
    compute_dtype = jnp.dtype(compute_dtype)

    logits_ncs = logits.reshape(n, c, s)

    # Pad the class dim to a sublane multiple with -inf logits (exp(-inf)=0, result
    # unchanged); ragged C forces masked partial-vreg sublane reductions otherwise.
    sublane = 16 if in_dtype == jnp.bfloat16 else 8
    c_pad = ((c + sublane - 1) // sublane) * sublane
    if c_pad != c:
        # TODO(synk): fuse this padding into the logits producer (final_conv) so it
        # does not cost a separate HBM pass in the wrapper.
        logits_ncs = jnp.pad(logits_ncs, ((0, 0), (0, c_pad - c), (0, 0)),
                             constant_values=float("-inf"))

    # Targets streamed as int8 when ids fit (4x less HBM traffic).  Ids >= 128 (e.g.
    # ignore_index=255) wrap to negative values that never match a class, which is
    # exactly one_hot's all-zero-row behavior in the reference.
    tgt_dtype = jnp.int8 if c <= 127 else jnp.int32
    targets_n1s = targets.reshape(n, 1, s).astype(tgt_dtype)

    if spatial_tile is None:
        spatial_tile = _auto_spatial_tile(s, c_pad, in_dtype.itemsize,
                                          compute_dtype.itemsize, N_SPATIAL_SPLITS)
    assert spatial_tile % 128 == 0 and spatial_tile >= 128

    tiles_total = pl.cdiv(s, spatial_tile)
    tiles_per_split = pl.cdiv(tiles_total, N_SPATIAL_SPLITS)
    # True iff some grid tile can touch lanes past S (partial tail or fully-OOB tile).
    any_tail = not (s % spatial_tile == 0
                    and tiles_total == N_SPATIAL_SPLITS * tiles_per_split)

    # Spatial index map; fully out-of-range tiles (odd tile counts) are clamped onto
    # the last real block -- the kernel's validity mask zeroes their contribution.
    if N_SPATIAL_SPLITS * tiles_per_split == tiles_total:
        def s_map(bi, hi, si):
            return (bi, 0, hi * tiles_per_split + si)
    else:
        def s_map(bi, hi, si):
            return (bi, 0, jnp.minimum(hi * tiles_per_split + si, tiles_total - 1))

    grid = (n, N_SPATIAL_SPLITS, tiles_per_split)

    inter, denom = pl.pallas_call(
        partial(_dice_kernel, s_total=s, tile=spatial_tile,
                tiles_per_split=tiles_per_split, compute_dtype=compute_dtype,
                any_tail=any_tail),
        out_shape=(
            jax.ShapeDtypeStruct((n, N_SPATIAL_SPLITS, c_pad, 1), jnp.float32),
            jax.ShapeDtypeStruct((n, N_SPATIAL_SPLITS, c_pad, 1), jnp.float32),
        ),
        grid_spec=pltpu.PrefetchScalarGridSpec(
            num_scalar_prefetch=0,
            grid=grid,
            in_specs=[
                pl.BlockSpec((1, c_pad, spatial_tile), s_map),
                pl.BlockSpec((1, 1, spatial_tile), s_map),
            ],
            out_specs=[
                pl.BlockSpec((1, 1, c_pad, 1), lambda bi, hi, si: (bi, hi, 0, 0)),
                pl.BlockSpec((1, 1, c_pad, 1), lambda bi, hi, si: (bi, hi, 0, 0)),
            ],
        ),
        compiler_params=pltpu.CompilerParams(
            # Batch axis AND spatial-half axis are independent -> megacore-shardable
            # on v7x even at batch 1; the innermost axis carries the accumulation.
            dimension_semantics=("parallel", "parallel", "arbitrary"),
        ),
    )(logits_ncs, targets_n1s)

    inter = jnp.sum(inter[:, :, :c, 0], axis=1)      # (N, C): merge the two halves
    denom = jnp.sum(denom[:, :, :c, 0], axis=1)
    dice = (2.0 * inter + SMOOTH) / (denom + SMOOTH)
    # TODO(synk): a per-class `weight` (None in this module) would multiply `dice` here.
    return 1.0 - jnp.mean(dice)


def dice_loss_ref(logits, targets):
    """Pure-JAX reference mirroring the PyTorch DiceLoss."""
    n, c = logits.shape[0], logits.shape[1]
    logits = logits.astype(jnp.float32)
    p = jax.nn.softmax(logits, axis=1)
    oh = jax.nn.one_hot(targets, c, dtype=jnp.float32)       # (N, H, W, C)
    oh = jnp.transpose(oh, (0, 3, 1, 2))                      # (N, C, H, W)
    p = p.reshape(n, c, -1)
    oh = oh.reshape(n, c, -1)
    inter = jnp.sum(p * oh, axis=2)
    union = jnp.sum(p, axis=2) + jnp.sum(oh, axis=2)
    dice = (2.0 * inter + SMOOTH) / (union + SMOOTH)
    return 1.0 - jnp.mean(dice)


if __name__ == "__main__":
    key = jax.random.PRNGKey(0)
    k1, k2, k3, k4 = jax.random.split(key, 4)

    # Case 1: f32 logits, spatial size divides the tile -> static unmasked fast path,
    # both spatial halves fully populated.
    N, C, H, W = 2, 4, 16, 16
    logits = jax.random.normal(k1, (N, C, H, W), dtype=jnp.float32)
    targets = jax.random.randint(k2, (N, H, W), 0, C, dtype=jnp.int32)

    loss = jax.block_until_ready(dice_loss(logits, targets))
    ref = dice_loss_ref(logits, targets)
    assert jnp.allclose(loss, ref, rtol=2e-3, atol=1e-4), (loss, ref)

    # Case 2: bf16 logits, spatial size NOT a tile multiple, odd total tile count ->
    # exercises bf16 intermediates (on v6e/v7x), the masked tail tile and the clamped
    # fully-out-of-range tile of the second spatial half.
    N2, C2, H2, W2 = 2, 4, 18, 18
    logits2 = jax.random.normal(k3, (N2, C2, H2, W2), dtype=jnp.bfloat16)
    targets2 = jax.random.randint(k4, (N2, H2, W2), 0, C2, dtype=jnp.int32)

    loss2 = jax.block_until_ready(dice_loss(logits2, targets2, spatial_tile=128))
    ref2 = dice_loss_ref(logits2, targets2)
    assert jnp.allclose(loss2, ref2, rtol=1e-2, atol=2e-3), (loss2, ref2)

    print("KERNEL_OK")
</pallas_src>

<mosaic_0001>
module attributes {stable_mosaic.version = 11 : i64} {
  func.func @_dice_kernel(%arg0: i32, %arg1: i32, %arg2: i32, %arg3: memref<1x8x128xf32, #tpu.memory_space<vmem>>, %arg4: memref<1x1x128xi8, #tpu.memory_space<vmem>>, %arg5: memref<1x1x8x1xf32, #tpu.memory_space<vmem>>, %arg6: memref<1x1x8x1xf32, #tpu.memory_space<vmem>>) attributes {dimension_semantics = [#tpu.dimension_semantics<parallel>, #tpu.dimension_semantics<parallel>, #tpu.dimension_semantics<arbitrary>], iteration_bounds = array<i64: 2, 2, 1>, scalar_prefetch = 0 : i64, scratch_operands = 0 : i64, tpu.core_type = #tpu.core_type<tc>, window_params = [{transform_indices = @transform_0, window_bounds = array<i64: 1, 8, 128>}, {transform_indices = @transform_1, window_bounds = array<i64: 1, 1, 128>}, {transform_indices = @transform_2, window_bounds = array<i64: 1, 1, 8, 1>}, {transform_indices = @transform_3, window_bounds = array<i64: 1, 1, 8, 1>}]} {
    %c0_i32 = arith.constant 0 : i32
    %0 = arith.cmpi eq, %arg2, %c0_i32 : i32
    %1 = arith.extui %0 : i1 to i32
    %c0_i32_0 = arith.constant 0 : i32
    %2 = arith.cmpi ne, %1, %c0_i32_0 : i32
    scf.if %2 {
      %cst_26 = arith.constant 0.000000e+00 : f32
      %44 = vector.broadcast %cst_26 : f32 to vector<1x1x8x1xf32>
      %c0_27 = arith.constant 0 : index
      %c0_28 = arith.constant 0 : index
      %c0_29 = arith.constant 0 : index
      %c0_30 = arith.constant 0 : index
      %45 = vector.load %arg5[%c0_27, %c0_28, %c0_29, %c0_30] : memref<1x1x8x1xf32, #tpu.memory_space<vmem>>, vector<1x1x8x1xf32>
      tpu.vector_store %arg5[%c0_27, %c0_28, %c0_29, %c0_30], %44 {strides = array<i32>} : memref<1x1x8x1xf32, #tpu.memory_space<vmem>>, vector<1x1x8x1xf32>,
      %cst_31 = arith.constant 0.000000e+00 : f32
      %46 = vector.broadcast %cst_31 : f32 to vector<1x1x8x1xf32>
      %c0_32 = arith.constant 0 : index
      %c0_33 = arith.constant 0 : index
      %c0_34 = arith.constant 0 : index
      %c0_35 = arith.constant 0 : index
      %47 = vector.load %arg6[%c0_32, %c0_33, %c0_34, %c0_35] : memref<1x1x8x1xf32, #tpu.memory_space<vmem>>, vector<1x1x8x1xf32>
      tpu.vector_store %arg6[%c0_32, %c0_33, %c0_34, %c0_35], %46 {strides = array<i32>} : memref<1x1x8x1xf32, #tpu.memory_space<vmem>>, vector<1x1x8x1xf32>,
    } else {
    }
    %c0 = arith.constant 0 : index
    %c0_1 = arith.constant 0 : index
    %c0_2 = arith.constant 0 : index
    %3 = vector.load %arg3[%c0, %c0_1, %c0_2] : memref<1x8x128xf32, #tpu.memory_space<vmem>>, vector<1x8x128xf32>
    %4 = vector.shape_cast %3 : vector<1x8x128xf32> to vector<8x128xf32>
    %c0_3 = arith.constant 0 : index
    %c0_4 = arith.constant 0 : index
    %c0_5 = arith.constant 0 : index
    %5 = vector.load %arg4[%c0_3, %c0_4, %c0_5] : memref<1x1x128xi8, #tpu.memory_space<vmem>>, vector<1x1x128xi8>
    %6 = vector.shape_cast %5 : vector<1x1x128xi8> to vector<1x128xi8>
    %7 = arith.extsi %6 : vector<1x128xi8> to vector<1x128xi32>
    %cst = arith.constant dense<0xFF800000> : vector<128xf32>
    %8 = vector.multi_reduction <maximumf>, %4, %cst [0] : vector<8x128xf32> to vector<128xf32>
    %9 = vector.shape_cast %8 : vector<128xf32> to vector<1x128xf32>
    %10 = vector.broadcast %9 : vector<1x128xf32> to vector<8x128xf32>
    %11 = arith.subf %4, %10 : vector<8x128xf32>
    %12 = math.exp %11 : vector<8x128xf32>
    %cst_6 = arith.constant dense<0.000000e+00> : vector<128xf32>
    %13 = vector.multi_reduction <add>, %12, %cst_6 [0] : vector<8x128xf32> to vector<128xf32>
    %14 = vector.shape_cast %13 : vector<128xf32> to vector<1x128xf32>
    %15 = tpu.reciprocal %14 {approx = true} : vector<1x128xf32> -> vector<1x128xf32>
    %16 = vector.broadcast %15 : vector<1x128xf32> to vector<8x128xf32>
    %17 = arith.mulf %12, %16 : vector<8x128xf32>
    %18 = tpu.iota {dimensions = array<i32: 0>} : vector<8x1xi32>
    %19 = vector.broadcast %18 : vector<8x1xi32> to vector<8x128xi32>
    %20 = vector.broadcast %7 : vector<1x128xi32> to vector<8x128xi32>
    %21 = arith.cmpi eq, %19, %20 : vector<8x128xi32>
    %22 = arith.extui %21 : vector<8x128xi1> to vector<8x128xi32>
    %23 = arith.sitofp %22 : vector<8x128xi32> to vector<8x128xf32>
    %c0_i32_7 = arith.constant 0 : i32
    %24 = arith.sitofp %c0_i32_7 : i32 to f32
    %25 = vector.broadcast %24 : f32 to vector<8x128xf32>
    %26 = arith.select %21, %17, %25 : vector<8x128xi1>, vector<8x128xf32>
    %27 = arith.addf %17, %23 : vector<8x128xf32>
    %c0_8 = arith.constant 0 : index
    %c0_9 = arith.constant 0 : index
    %c0_10 = arith.constant 0 : index
    %c0_11 = arith.constant 0 : index
    %28 = vector.load %arg5[%c0_8, %c0_9, %c0_10, %c0_11] : memref<1x1x8x1xf32, #tpu.memory_space<vmem>>, vector<1x1x8x1xf32>
    %29 = vector.shape_cast %28 : vector<1x1x8x1xf32> to vector<8x1xf32>
    %cst_12 = arith.constant dense<0.000000e+00> : vector<8xf32>
    %30 = vector.multi_reduction <add>, %26, %cst_12 [1] : vector<8x128xf32> to vector<8xf32>
    %31 = vector.shape_cast %30 : vector<8xf32> to vector<8x1xf32>
    %32 = arith.addf %29, %31 : vector<8x1xf32>
    %c0_13 = arith.constant 0 : index
    %c0_14 = arith.constant 0 : index
    %c0_15 = arith.constant 0 : index
    %c0_16 = arith.constant 0 : index
    %33 = vector.load %arg5[%c0_13, %c0_14, %c0_15, %c0_16] : memref<1x1x8x1xf32, #tpu.memory_space<vmem>>, vector<1x1x8x1xf32>
    %34 = vector.shape_cast %33 : vector<1x1x8x1xf32> to vector<8x1xf32>
    %35 = vector.shape_cast %32 : vector<8x1xf32> to vector<1x1x8x1xf32>
    tpu.vector_store %arg5[%c0_13, %c0_14, %c0_15, %c0_16], %35 {strides = array<i32>} : memref<1x1x8x1xf32, #tpu.memory_space<vmem>>, vector<1x1x8x1xf32>,
    %c0_17 = arith.constant 0 : index
    %c0_18 = arith.constant 0 : index
    %c0_19 = arith.constant 0 : index
    %c0_20 = arith.constant 0 : index
    %36 = vector.load %arg6[%c0_17, %c0_18, %c0_19, %c0_20] : memref<1x1x8x1xf32, #tpu.memory_space<vmem>>, vector<1x1x8x1xf32>
    %37 = vector.shape_cast %36 : vector<1x1x8x1xf32> to vector<8x1xf32>
    %cst_21 = arith.constant dense<0.000000e+00> : vector<8xf32>
    %38 = vector.multi_reduction <add>, %27, %cst_21 [1] : vector<8x128xf32> to vector<8xf32>
    %39 = vector.shape_cast %38 : vector<8xf32> to vector<8x1xf32>
    %40 = arith.addf %37, %39 : vector<8x1xf32>
    %c0_22 = arith.constant 0 : index
    %c0_23 = arith.constant 0 : index
    %c0_24 = arith.constant 0 : index
    %c0_25 = arith.constant 0 : index
    %41 = vector.load %arg6[%c0_22, %c0_23, %c0_24, %c0_25] : memref<1x1x8x1xf32, #tpu.memory_space<vmem>>, vector<1x1x8x1xf32>
    %42 = vector.shape_cast %41 : vector<1x1x8x1xf32> to vector<8x1xf32>
    %43 = vector.shape_cast %40 : vector<8x1xf32> to vector<1x1x8x1xf32>
    tpu.vector_store %arg6[%c0_22, %c0_23, %c0_24, %c0_25], %43 {strides = array<i32>} : memref<1x1x8x1xf32, #tpu.memory_space<vmem>>, vector<1x1x8x1xf32>,
    return
  }
  func.func @transform_0(%arg0: i32, %arg1: i32, %arg2: i32) -> (i32, i32, i32) {
    %c1_i32 = arith.constant 1 : i32
    %0 = arith.muli %arg1, %c1_i32 : i32
    %1 = arith.addi %0, %arg2 : i32
    %c0_i32 = arith.constant 0 : i32
    %c0_i32_0 = arith.constant 0 : i32
    return %arg0, %c0_i32, %1 : i32, i32, i32
  }
  func.func @transform_1(%arg0: i32, %arg1: i32, %arg2: i32) -> (i32, i32, i32) {
    %c1_i32 = arith.constant 1 : i32
    %0 = arith.muli %arg1, %c1_i32 : i32
    %1 = arith.addi %0, %arg2 : i32
    %c0_i32 = arith.constant 0 : i32
    %c0_i32_0 = arith.constant 0 : i32
    return %arg0, %c0_i32, %1 : i32, i32, i32
  }
  func.func @transform_2(%arg0: i32, %arg1: i32, %arg2: i32) -> (i32, i32, i32, i32) {
    %c0_i32 = arith.constant 0 : i32
    %c0_i32_0 = arith.constant 0 : i32
    %c0_i32_1 = arith.constant 0 : i32
    return %arg0, %arg1, %c0_i32, %c0_i32_0 : i32, i32, i32, i32
  }
  func.func @transform_3(%arg0: i32, %arg1: i32, %arg2: i32) -> (i32, i32, i32, i32) {
    %c0_i32 = arith.constant 0 : i32
    %c0_i32_0 = arith.constant 0 : i32
    %c0_i32_1 = arith.constant 0 : i32
    return %arg0, %arg1, %c0_i32, %c0_i32_0 : i32, i32, i32, i32
  }
}

</mosaic_0001>

<bundles_post_ra>
// kernel: tpu_custom_call.1
= control target key start
LH: loop header
LB: loop body
LE: loop exit
PB: predicated region body
PF: predicated region fallthrough
CT: control target
= control target key end

     0   :  { %9 = vsyncpa [#allocation3], 0  ;;  %s829_s0 = inlined_call_operand.hbm [shape: f32[2,8,256], index: 0, kind: input, shape index: {}]   ;;  %s830_s1 = inlined_call_operand.vmem [shape: s8[2,1,256], index: 1, kind: input, shape index: {}]   ;;  %s831_s2 = inlined_call_operand.vmem [shape: f32[2,2,8,1], index: 2, kind: output, shape index: {0}]   ;;  %s832_s3 = inlined_call_operand.vmem [shape: f32[2,2,8,1], index: 3, kind: output, shape index: {1}]  }
   0x1   :  { %11 = vsyncpa [#allocation3 + $0x1], 0  ;;  %s699_s12 = smov 0   ;;  %s701_s13 = smov 0  }
   0x2   :  { %s703_s14 = smov 0   ;;  %s705_s15 = smov 0  }
   0x3   :  { %s707_s16 = smov 0   ;;  %s709_s17 = smov 0  }
   0x4   :  { %s711_s18 = smov 0   ;;  %s713_s19 = smov 0  }
   0x5 LB: > { %s487_s20 = sadd.s32 4294967295, %s676_s19   ;;  %s32_s21 = sadd.s32 1, %s668_s17  ;;  %s676_s19 = sphi %s713_s19, %s17_s19   ;;  %s672_s18 = sphi %s711_s18, %s841_s18   ;;  %s668_s17 = sphi %s709_s17, %s840_s17   ;;  %s664_s16 = sphi %s707_s16, %s839_s16   ;;  %s660_s15 = sphi %s705_s15, %s838_s15   ;;  %s656_s14 = sphi %s703_s14, %s837_s14   ;;  %s652_s13 = sphi %s701_s13, %s836_s13   ;;  %s648_s12 = sphi %s699_s12, %s835_s12  }
   0x6   : > { %p34_p0 = scmp.ge.s32.totalorder %s32_s21, 2  ;;  %s36_s22 = sadd.s32 1, %s672_s18 }
   0x7   : > { %s47_s23 = sadd.s32 1, %s656_s14  ;;  %p54_p1 = scmp.ne.s32.totalorder %s656_s14, %s652_s13 }
   0x8   : > { %s843_s21 = smov (%p34_p0, %s32_s21), 0  ;;  %s845_s22 = smov (!%p34_p0, %s36_s22), %s672_s18 }
   0x9   : > { %s43_s24 = ssub.s32 %s668_s17, %s843_s21  ;;  %p55_p2 = scmp.eq.s32.totalorder %s676_s19, 0 }
   0xa   : > { %p38_p3 = scmp.ge.s32.totalorder %s845_s22, 2  ;;  %p60_p4 = scmp.ne.s32.totalorder %s652_s13, %s648_s12 }
   0xb   : > { %p750_p5 = por %p55_p2, %p54_p1  ;;  %p61_p6 = scmp.eq.s32.totalorder %s487_s20, 0 }
   0xc   : > { %s847_s22 = smov (%p38_p3, %s845_s22), 0  ;;  %p510_p8 = scmp.lt.s32.totalorder %s676_s19, 4 }
   0xd   : > { %p756_p7 = por %p61_p6, %p60_p4  ;;  %s42_s27 = ssub.s32 %s672_s18, %s847_s22 }
   0xe   : > { %s44_s28 = sor.u32 %s43_s24, %s42_s27  ;;  %s170_s29 = sand.u32 1, %s656_s14  }
   0xf   : > { %p45_p9 = scmp.eq.s32.totalorder %s44_s28, 0  ;;  %s491_s30 = sshll.u32 %s170_s29, 3 }
  0x10   : > { %s492_s4 = sshll.u32 %s672_s18, 1  ;;  %s174_s8 = scalar_lea.vmem [#allocation2], %s491_s30 }
  0x11   : > { %s766_s5 = scalar_select %p45_p9, %s656_s14, %s47_s23  }
  0x12   : > { %s179_s6 = sadd.s32 %s668_s17, %s492_s4  ;;  %s185_s9 = sshll.u32 %s174_s8, 4  ;;  %s186_s9 = int_to_ptr.vmem [resolvable:$true] %s185_s9 }
  0x13   : > { %s493_s7 = sshll.u32 %s179_s6, 3  ;;  %p507_p10 = pnand %p510_p8, %p750_p5 }
  0x14   : > { %s181_s12 = scalar_lea.hbm %s829_s0, %s493_s7  ;;  %p494_p11 = scmp.ge.s32.totalorder %s676_s19, 1 }
  0x15   : > { %s183_s20 = sshll.u32 %s181_s12, 4  ;;  %p202_p12 = scmp.lt.s32.totalorder %s676_s19, 5  ;;  %s184_s20 = int_to_ptr.hbm [resolvable:$true] %s183_s20 }
  0x16   : > { %s171_s24 = scalar_lea.sflag [#allocation3], %s170_s29 }
  0x17   : > { %509 = dma.hbm_to_vmem [thread:$0]  (!%p507_p10), %s184_s20, 128, %s186_s9, %s171_s24  }
  0x18   : > { %p203_p13 = pnand %p494_p11, %p202_p12 }
  0x19   : > { %s208_s23 = sand.u32 (!%p203_p13), 1, %s652_s13  }
  0x1a   : > { %206 = sbr.rel (%p203_p13) target bundleno = 205 (0xcd), region = 28  ;;  %s495_s27 = sshll.u32 (!%p203_p13), %s208_s23, 3 }
  0x1b   : > { %s209_s28 = scalar_lea.sflag (!%p203_p13), [#allocation3], %s208_s23  ;;  %s212_s30 = scalar_lea.vmem (!%p203_p13), [#allocation2], %s495_s27 }
  0x1f   : > { %643 = dma.done.wait (%p756_p7), %s209_s28, 128  }
  0x20   : > { %645 = vsyncadd (%p756_p7), %s209_s28, 4294967168  ;;  %v288_v0 = vld [vmem:[%s212_s30] sm:$0xff]  ;;  %p257_p0 = scmp.lt.s32.totalorder %s664_s16, 1  ;;  %p259_p1 = scmp.lt.s32.totalorder %s660_s15, 1  ;;  %vm285_vm0 = vcmask 7168   ;;  %v678_v10 = vmov 0.0   ;;  %v308_v19 = vlaneseq }
  0x21   : > { %v291_v1 = vrot.slane %v288_v0, 4 }
  0x22   : > { %s849_s16 = smov (!%p257_p0, %s664_s16), 1  ;;  %s851_s15 = smov (!%p259_p1, %s660_s15), 1  ;;  %v309_v20 = vshrl.u32 %v308_v19, 7 }
  0x23   : > { %v292_v2 = vmax.f32 %v288_v0, %v291_v1  ;;  %s496_s25 = sshll.u32 %s849_s16, 1 }
  0x24   : > { %s262_s26 = sadd.s32 %s496_s25, %s851_s15 }
  0x25   : > { %v293_v3 = vrot.slane %v292_v2, 2  ;;  %s498_s29 = sshll.u32 %s262_s26, 3  ;;  %s263_s9 = scalar_lea.vmem %s830_s1, %s262_s26 }
  0x26   : > { %s790_s7 = scalar_lea.vmem %s831_s2, %s498_s29  ;;  %v289_v15 = vld [vmem:[%s263_s9] sm:$0x1]  ;;  %s280_s11 = scalar_lea.vmem %s832_s3, %s498_s29 }
  0x27   : > { %v294_v4 = vmax.f32 %v292_v2, %v293_v3  ;;  %286 = vst.msk [vmem:[%s790_s7] sm:$0xff] %vm285_vm0, %v678_v10  ;;  %v290_v17 = vunpack.c.0.s8 %v289_v15 }
  0x28   : > { %287 = vst.msk [vmem:[%s280_s11] sm:$0xff] %vm285_vm0, %v678_v10 }
  0x29   : > { %v295_v5 = vrot.slane %v294_v4, 1  ;;  %v310_v21 = vperm.slane %v290_v17, 0 }
  0x2b   : > { %v296_v6 = vmax.f32 %v294_v4, %v295_v5  ;;  %vm311_vm1 = vcmp.eq.s32.totalorder %v309_v20, %v310_v21 }
  0x2c   : > { %v501_v25 = vsel %vm311_vm1, 1.0, %v678_v10 }
  0x2d   : > { %v297_v7 = vsub.f32 %v288_v0, %v296_v6 }
  0x2e   : > { %v316_v27 = vld [vmem:[%s790_s7] sm:$0xff] }
  0x2f   : > { %v298_v8 = vmul.f32 1.442695, %v297_v7  ;;  %v322_v30 = vld [vmem:[%s280_s11] sm:$0xff] }
  0x31   : > { %576 = vpow2.f32 %v298_v8 }
  0x37   : > { %v577_v9 = vpop.eup %576 }
  0x38   : > { %v300_v11 = vrot.slane %v577_v9, 4 }
  0x3a   : > { %v301_v12 = vadd.f32 %v577_v9, %v300_v11 }
  0x3c   : > { %v302_v13 = vrot.slane %v301_v12, 2 }
  0x3e   : > { %v303_v14 = vadd.f32 %v302_v13, %v301_v12 }
  0x40   : > { %v304_v16 = vrot.slane %v303_v14, 1 }
  0x42   : > { %v305_v18 = vadd.f32 %v304_v16, %v303_v14 }
  0x44   : > { %578 = vrcp.f32 %v305_v18 }
  0x4a   : > { %v579_v22 = vpop.eup %578 }
  0x4b   : > { %v307_v23 = vmul.f32 %v579_v22, %v577_v9 }
  0x4d   : > { %v314_v24 = vsel %vm311_vm1, %v307_v23, 0.0  ;;  %v315_v26 = vadd.f32 %v501_v25, %v307_v23 }
  0x4e   : > { %317 = vadd.xlane.f32.xlu0 %v314_v24 }
  0x56   : > { %323 = vadd.xlane.f32.xlu0 %v315_v26 }
  0xc1   : > { %v318_v28 = vpop.xlane.xlu0 %317 }
  0xc2   : > { %v319_v29 = vadd.f32 %v318_v28, %v316_v27 }
  0xc4   : > { %321 = vst.msk [vmem:[%s790_s7] sm:$0xff] %vm285_vm0, %v319_v29 }
  0xc9   : > { %v324_v31 = vpop.xlane.xlu0 %323 }
  0xca   : > { %v325_v32 = vadd.f32 %v324_v31, %v322_v30 }
  0xcc   : > { %326 = vst.msk [vmem:[%s280_s11] sm:$0xff] %vm285_vm0, %v325_v32 }
  0xcd PF: > { %s17_s19 = sadd.s32 1, %s676_s19   ;;  %s835_s12 = smov %s652_s13 }
  0xce   : > { %p14_p2 = scmp.ge.s32.totalorder %s17_s19, 6   ;;  %s836_s13 = smov %s656_s14 }
  0xcf   : > { %s837_s14 = smov %s766_s5  ;;  %s838_s15 = smov %s668_s17 }
  0xd0   : > { %s839_s16 = smov %s672_s18  ;;  %s840_s17 = smov %s843_s21 }
  0xd1   : > { %s841_s18 = smov %s847_s22  ;;  %16 = sbr.rel (!%p14_p2) target bundleno = 5 (0x5), region = 87 }
  0xd6   :  { %376 = vsyncpa [#allocation3], 1 }
  0xd7   :  { %378 = vsyncpa [#allocation3 + $0x1], 1 }

</bundles_post_ra>
